<compile_context>
chip_gen: v5e
topology: v5e:2x2
jax: 0.10.0
libtpu: 0.0.40
codegen_flags: <defaults>
</compile_context>

<pallas_src>
import jax
import jax.numpy as jnp
from jax.experimental import pallas as pl
from jax.experimental.pallas import tpu as pltpu


def _nsp_kernel(x_ref, w_ref, b_ref, o_ref):
    # x_ref: [tb, D] VMEM (CLS rows only), w_ref: [2, D] VMEM (lane-dense),
    # b_ref: [2] SMEM scalars, o_ref: [tb, 2] VMEM.
    acc = jax.lax.dot_general(
        x_ref[...],
        w_ref[...],
        dimension_numbers=(((1,), (1,)), ((), ())),  # contract over D (x @ w.T)
        preferred_element_type=jnp.float32,
    )  # [tb, 2] f32

    # Bias add from the two SMEM scalars (only 2 output classes).
    col = jax.lax.broadcasted_iota(jnp.int32, acc.shape, dimension=1)
    bias = jnp.where(col == 0, b_ref[0], b_ref[1])
    o_ref[...] = (acc + bias).astype(o_ref.dtype)


def _pick_batch_tile(B, D, itemsize, target_bytes=4 << 20, max_tile=1024):
    """Batch tile sized so tile*D*itemsize ~= target; multiple of 8 when tiling."""
    if B <= 8 or B * D * itemsize <= target_bytes:
        return B
    tb = max(8, int(target_bytes // (D * itemsize)))
    tb = min((tb // 8) * 8, max_tile)
    return min(tb, B)


def nsp_forward(inp, weight, bias):
    """inp: [B, S, D]; weight: [2, D]; bias: [2] (PyTorch nn.Linear layout)."""
    B, S, D = inp.shape
    assert weight.shape == (2, D) and bias.shape == (2,)
    out_dtype = jnp.result_type(inp.dtype, weight.dtype)

    # Fold the CLS (token 0) select into the block DMA: view the input as
    # [B, S*D]; column-block 0 of width D is exactly token 0 of every row.
    # (Reshape of a contiguous row-major array is a layout no-op, not an HBM copy.)
    if D % 128 == 0 or S == 1:
        x_in = inp.reshape(B, S * D)
    else:
        # TODO(synk): for lane-unaligned D keep tiling simple with a wrapper-side CLS slice.
        x_in = inp[:, 0, :]

    itemsize_x = jnp.dtype(inp.dtype).itemsize
    tb = _pick_batch_tile(B, D, itemsize_x)
    grid = (pl.cdiv(B, tb),)

    cost = pl.CostEstimate(
        flops=2 * B * D * 2,
        transcendentals=0,
        bytes_accessed=(
            B * D * itemsize_x
            + 2 * D * jnp.dtype(weight.dtype).itemsize
            + 2 * jnp.dtype(bias.dtype).itemsize
            + B * 2 * jnp.dtype(out_dtype).itemsize
        ),
    )

    return pl.pallas_call(
        _nsp_kernel,
        out_shape=jax.ShapeDtypeStruct((B, 2), out_dtype),
        grid=grid,
        in_specs=[
            # CLS rows: strided DMA straight from HBM (row i*tb.., first D cols).
            pl.BlockSpec((tb, D), lambda i: (i, 0)),
            # Weight, lane-dense [2, D], grid-invariant -> fetched once.
            pl.BlockSpec((2, D), lambda i: (0, 0)),
            # Bias: two scalars in SMEM, no padded VMEM tile.
            pl.BlockSpec(memory_space=pltpu.MemorySpace.SMEM),
        ],
        out_specs=pl.BlockSpec((tb, 2), lambda i: (i, 0)),
        compiler_params=pltpu.CompilerParams(
            dimension_semantics=("parallel",),
        ),
        cost_estimate=cost,
    )(x_in, weight, bias)


if __name__ == "__main__":
    # Small, deterministic setup consistent with the module's forward.
    # Hidden size picked lane-aligned (multiple of 128), like real BERT dims.
    B, S, D = 8, 8, 128
    key = jax.random.PRNGKey(0)
    k_in, k_w, k_b = jax.random.split(key, 3)

    inp = jax.random.normal(k_in, (B, S, D), dtype=jnp.float32)
    # nn.Linear(d_model, 2): weight [2, D], bias [2] (PyTorch layout, no transpose).
    weight = jax.random.normal(k_w, (2, D), dtype=jnp.float32) * 0.02
    bias = jax.random.normal(k_b, (2,), dtype=jnp.float32) * 0.02

    out = jax.block_until_ready(nsp_forward(inp, weight, bias))

    # Reference check in plain JAX (same math).
    ref = inp[:, 0, :] @ weight.T + bias
    assert out.shape == (B, 2)
    assert jnp.allclose(out, ref, atol=1e-5, rtol=1e-5)

    print("KERNEL_OK")
</pallas_src>

<mosaic_0001>
module attributes {stable_mosaic.version = 11 : i64} {
  func.func @_nsp_kernel(%arg0: i32, %arg1: memref<8x128xf32, #tpu.memory_space<vmem>>, %arg2: memref<2x128xf32, #tpu.memory_space<vmem>>, %arg3: memref<2xf32, #tpu.memory_space<smem>>, %arg4: memref<8x2xf32, #tpu.memory_space<vmem>>) attributes {dimension_semantics = [#tpu.dimension_semantics<parallel>], iteration_bounds = array<i64: 1>, scalar_prefetch = 0 : i64, scratch_operands = 0 : i64, tpu.core_type = #tpu.core_type<tc>, window_params = [{transform_indices = @transform_0, window_bounds = array<i64: 8, 128>}, {pipeline_mode = #tpu.pipeline_mode<synchronous>, transform_indices = @transform_1, window_bounds = array<i64: 2, 128>}, {transform_indices = @transform_2, window_bounds = array<i64: 2>}, {transform_indices = @transform_3, window_bounds = array<i64: 8, 2>}]} {
    %c0 = arith.constant 0 : index
    %c0_0 = arith.constant 0 : index
    %0 = vector.load %arg1[%c0, %c0_0] : memref<8x128xf32, #tpu.memory_space<vmem>>, vector<8x128xf32>
    %c0_1 = arith.constant 0 : index
    %c0_2 = arith.constant 0 : index
    %1 = vector.load %arg2[%c0_1, %c0_2] : memref<2x128xf32, #tpu.memory_space<vmem>>, vector<2x128xf32>
    %cst = arith.constant dense<0.000000e+00> : vector<8x2xf32>
    %2 = tpu.matmul %0, %1, %cst {dimension_numbers = #tpu.dot_dimension_numbers<[1], [1], [0], [0], [0, 0, 1, 0], [], []>} : vector<8x128xf32>, vector<2x128xf32>, vector<8x2xf32> -> vector<8x2xf32>
    %3 = tpu.iota {dimensions = array<i32: 1>} : vector<8x2xi32>
    %c0_i32 = arith.constant 0 : i32
    %4 = vector.broadcast %c0_i32 : i32 to vector<8x2xi32>
    %5 = arith.cmpi eq, %3, %4 : vector<8x2xi32>
    %c0_3 = arith.constant 0 : index
    %6 = memref.load %arg3[%c0_3] : memref<2xf32, #tpu.memory_space<smem>>
    %c1 = arith.constant 1 : index
    %7 = memref.load %arg3[%c1] : memref<2xf32, #tpu.memory_space<smem>>
    %8 = vector.broadcast %6 : f32 to vector<8x2xf32>
    %9 = vector.broadcast %7 : f32 to vector<8x2xf32>
    %10 = arith.select %5, %8, %9 : vector<8x2xi1>, vector<8x2xf32>
    %11 = arith.addf %2, %10 : vector<8x2xf32>
    %c0_4 = arith.constant 0 : index
    %c0_5 = arith.constant 0 : index
    %12 = vector.load %arg4[%c0_4, %c0_5] : memref<8x2xf32, #tpu.memory_space<vmem>>, vector<8x2xf32>
    tpu.vector_store %arg4[%c0_4, %c0_5], %11 {strides = array<i32>} : memref<8x2xf32, #tpu.memory_space<vmem>>, vector<8x2xf32>,
    return
  }
  func.func @transform_0(%arg0: i32) -> (i32, i32) {
    %c0_i32 = arith.constant 0 : i32
    %c0_i32_0 = arith.constant 0 : i32
    return %arg0, %c0_i32 : i32, i32
  }
  func.func @transform_1(%arg0: i32) -> (i32, i32) {
    %c0_i32 = arith.constant 0 : i32
    %c0_i32_0 = arith.constant 0 : i32
    %c0_i32_1 = arith.constant 0 : i32
    return %c0_i32, %c0_i32_0 : i32, i32
  }
  func.func @transform_2(%arg0: i32) -> i32 {
    %c0_i32 = arith.constant 0 : i32
    %c0_i32_0 = arith.constant 0 : i32
    return %c0_i32 : i32
  }
  func.func @transform_3(%arg0: i32) -> (i32, i32) {
    %c0_i32 = arith.constant 0 : i32
    %c0_i32_0 = arith.constant 0 : i32
    return %arg0, %c0_i32 : i32, i32
  }
}

</mosaic_0001>

<bundles_post_ra>
// kernel: tpu_custom_call.1
= control target key start
LH: loop header
LB: loop body
LE: loop exit
PB: predicated region body
PF: predicated region fallthrough
CT: control target
= control target key end

     0   :  { %8 = vsyncpa [#allocation3], 0  ;;  %s199_s0 = inlined_call_operand.hbm [shape: f32[8,1024], index: 0, kind: input, shape index: {}]   ;;  %s200_s1 = inlined_call_operand.hbm [shape: f32[2,128], index: 1, kind: input, shape index: {}]   ;;  %s201_s2 = inlined_call_operand.vmem [shape: f32[2], index: 2, kind: input, shape index: {}]   ;;  %s202_s3 = inlined_call_operand.vmem [shape: f32[8,2], index: 3, kind: output, shape index: {}]  }
   0x1   :  { %9 = vsyncpa [#allocation6], 0  ;;  %s16_s14 = sshll.u32 %s199_s0, 4  ;;  %s17_s14 = int_to_ptr.hbm [resolvable:$true] %s16_s14 }
   0x2   :  { %10 = vsyncpa [#allocation4], 0  ;;  %s164_s15 = smov [#allocation2]   ;;  %s27_s19 = sshll.u32 %s200_s1, 4  ;;  %s28_s19 = int_to_ptr.hbm [resolvable:$true] %s27_s19 }
   0x3   :  { %s18_s16 = sshll.u32 %s164_s15, 4  ;;  %s165_s20 = smov [#allocation5]   ;;  %s19_s16 = int_to_ptr.vmem [resolvable:$true] %s18_s16 }
   0x4   :  { %21 = dma.hbm_to_vmem [thread:$0]  %s17_s14, 128, %s19_s16, [#allocation3]  }
   0x5   :  { %s29_s21 = sshll.u32 %s165_s20, 4  ;;  %s38_s24 = sshll.u32 %s201_s2, 4  ;;  %s30_s21 = int_to_ptr.vmem [resolvable:$true] %s29_s21  ;;  %s39_s24 = int_to_ptr.vmem [resolvable:$true] %s38_s24 }
   0x6   :  { %32 = dma.hbm_to_vmem [thread:$0]  %s28_s19, 32, %s30_s21, [#allocation6]  }
   0x7   :  { %s166_s0 = smov [#allocation7]  }
   0x8   :  { %41 = dma.vmem_to_smem %s39_s24, 16, %s166_s0, [#allocation4]  }
   0x9   :  { %158 = dma.done.wait [#allocation3], 128  }
   0xa   :  { %159 = vsyncadd [#allocation3], 4294967168 }
   0xb   :  { %160 = dma.done.wait [#allocation6], 32  }
   0xc   :  { %161 = vsyncadd [#allocation6], 4294967264 }
   0xd   :  { %162 = dma.done.wait [#allocation4], 16  }
   0xe   :  { %163 = vsyncadd [#allocation4], 4294967280 }
   0xf   :  { %54 = sfence }
  0x10   :  { %v56_v0 = vld [vmem:[#allocation5] sm:$0x3]  ;;  %v55_v1 = vld [vmem:[#allocation2] sm:$0xff]  ;;  %s60_s1 = sld [smem:[#allocation7]]  ;;  %v57_v2 = vlaneseq  ;;  %vm85_vm1 = vcmask 15360  }
  0x11   :  { %80 = vmatpush.xpose.msra.mxu0 %v56_v0  ;;  %s94_s25 = sld [smem:[#allocation7 + $0x1]] }
  0x12   :  { %v58_v3 = vand.u32 127, %v57_v2 }
  0x14   :  { %81 = vmatmul.f32.vlgmr.msra.gmra.mxu0 %v55_v1  ;;  %vm59_vm0 = vcmp.eq.s32.totalorder %v58_v3, 0 }
  0x16   :  { %v62_v4 = vstv %s60_s1 }
  0x17   :  { %v63_v5 = vstv %s94_s25 }
  0x18   :  { %v64_v6 = vsel %vm59_vm0, %v62_v4, %v63_v5 }
  0x91   :  { %v82_v7 = vpop.f32.mrf.mxu0 }
  0x92   :  { %v83_v8 = vadd.f32 %v82_v7, %v64_v6 }
  0x94   :  { %86 = vst.msk [vmem:[%s202_s3] sm:$0xff] %vm85_vm1, %v83_v8 }
  0x95   :  { %91 = vsyncpa [#allocation3], 1 }
  0x96   :  { %92 = vsyncpa [#allocation6], 1 }
  0x97   :  { %93 = vsyncpa [#allocation4], 1 }

</bundles_post_ra>
